<compile_context>
chip_gen: v5e
topology: v5e:2x2
jax: 0.10.0
libtpu: 0.0.40
codegen_flags: <defaults>
</compile_context>

<pallas_src>
import functools

import jax
import jax.numpy as jnp
from jax import lax
from jax.experimental import pallas as pl
from jax.experimental.pallas import tpu as pltpu
import numpy as np

EPS = 1e-5                       # eps of BatchNorm2d / GroupNorm / InstanceNorm2d
_VMEM_LIMIT = 48 * 1024 * 1024   # raise scoped VMEM limit (defaults: 16/32 MiB)


def _round_up(a, b):
    return (a + b - 1) // b * b


def _choose_thw(hw, cin, c4):
    """Spatial (lane) tile size: multiple of 128, as large as a VMEM budget allows."""
    # conservative per-lane-column bytes: double-buffered x (bf16) + y (f32 out)
    per_col = 2 * (2 * cin + 2 * c4 + 4 * c4)
    budget = 24 * 1024 * 1024
    t = max(128, min(4096, (budget // per_col) // 128 * 128))
    return min(t, _round_up(hw, 128))


# ---------------- Pallas kernels ----------------

def _upconv_stats_kernel(x_ref, w_ref, b_ref, s_ref, ss_ref, *, hw, thw, padded):
    """ConvT-as-matmul + bias, accumulate per-row sum / sum-of-squares.

    x_ref  : (1, Cin, Thw)   bf16  input pixels, spatial along lanes
    w_ref  : (4*Cout, Cin)   bf16  weight, rows ordered (co, kh, kw)
    b_ref  : (4*Cout, 1)     f32   bias per output row
    s_ref / ss_ref : (1, 4*Cout, 1) f32  running sum / sum-of-squares per row,
        accumulated over the spatial ("arbitrary") grid axis.
    """
    j = pl.program_id(1)

    y = jnp.dot(w_ref[...], x_ref[0], preferred_element_type=jnp.float32)  # (4C, Thw)
    y = y + b_ref[...]

    if padded:  # zero the padded spatial positions before reducing
        col = j * thw + lax.broadcasted_iota(jnp.int32, y.shape, 1)
        y = jnp.where(col < hw, y, 0.0)

    @pl.when(j == 0)
    def _():
        s_ref[...] = jnp.zeros_like(s_ref)
        ss_ref[...] = jnp.zeros_like(ss_ref)

    s_ref[...] += jnp.sum(y, axis=1, keepdims=True)[None]
    ss_ref[...] += jnp.sum(y * y, axis=1, keepdims=True)[None]


def _upconv_apply_kernel(x_ref, w_ref, sc_ref, sh_ref, o_ref):
    """Recompute bias-free matmul and apply per-row scale/shift (bias folded in).

    o[0, r, :] = (W @ x)[r, :] * scale[r] + shift[r]
    """
    y = jnp.dot(w_ref[...], x_ref[0], preferred_element_type=jnp.float32)  # (4C, Thw)
    o_ref[0] = (y * sc_ref[0] + sh_ref[0]).astype(o_ref.dtype)


# ---------------- wrapper ----------------

def transp_conv_block(x, weight, bias, gamma, beta, normalization='gn',
                      num_groups=8):
    """x: (N, Cin, H, W) f32. weight: (Cin, Cout, 2, 2). bias/gamma/beta: (Cout,)."""
    N, Cin, H, W = x.shape
    Cout = weight.shape[1]
    HW = H * W
    C4 = 4 * Cout

    Thw = _choose_thw(HW, Cin, C4)
    HWp = _round_up(HW, Thw)
    n_hw = HWp // Thw
    padded = HWp != HW

    # ---- layout prep (cheap): x stays channel-major; weight -> (4C, Cin) rows=(co,kh,kw)
    x3 = x.reshape(N, Cin, HW).astype(jnp.bfloat16)              # free reshape
    if padded:
        x3 = jnp.pad(x3, ((0, 0), (0, 0), (0, HWp - HW)))
    w2 = jnp.transpose(weight, (1, 2, 3, 0)).reshape(C4, Cin).astype(jnp.bfloat16)
    b2 = jnp.repeat(bias, 4).reshape(C4, 1).astype(jnp.float32)  # row = co*4 + kh*2 + kw

    # ---- kernel 1: fused matmul + bias -> per-row sum / sumsq only ------------
    kern1 = functools.partial(_upconv_stats_kernel, hw=HW, thw=Thw, padded=padded)
    s_cols, ss_cols = pl.pallas_call(
        kern1,
        out_shape=(
            jax.ShapeDtypeStruct((N, C4, 1), jnp.float32),
            jax.ShapeDtypeStruct((N, C4, 1), jnp.float32),
        ),
        grid=(N, n_hw),
        in_specs=[
            pl.BlockSpec((1, Cin, Thw), lambda n, j: (n, 0, j)),
            pl.BlockSpec((C4, Cin), lambda n, j: (0, 0)),
            pl.BlockSpec((C4, 1), lambda n, j: (0, 0)),
        ],
        out_specs=(
            pl.BlockSpec((1, C4, 1), lambda n, j: (n, 0, 0)),
            pl.BlockSpec((1, C4, 1), lambda n, j: (n, 0, 0)),
        ),
        compiler_params=pltpu.CompilerParams(
            dimension_semantics=("parallel", "arbitrary"),
            vmem_limit_bytes=_VMEM_LIMIT),
    )(x3, w2, b2)

    # ---- tiny host math: per-(n, channel) scale/shift (never full-size) ------
    s = s_cols.reshape(N, Cout, 4)
    ss = ss_cols.reshape(N, Cout, 4)
    area = 4.0 * HW                                   # Ho*Wo per (n, channel)

    if normalization == 'bn':
        cnt = float(N) * area
        m = jnp.sum(s, axis=(0, 2)) / cnt                     # (Cout,)
        v = jnp.sum(ss, axis=(0, 2)) / cnt - m * m
        inv = lax.rsqrt(v + EPS)
        scale_nc = jnp.broadcast_to((gamma * inv)[None, :], (N, Cout))
        shift_nc = jnp.broadcast_to((beta - m * gamma * inv)[None, :], (N, Cout))
    elif normalization == 'gn':
        G = num_groups
        Cg = Cout // G
        sg = jnp.sum(s.reshape(N, G, Cg, 4), axis=(2, 3))     # (N, G)
        ssg = jnp.sum(ss.reshape(N, G, Cg, 4), axis=(2, 3))
        cnt = area * Cg
        m = sg / cnt
        v = ssg / cnt - m * m
        inv = lax.rsqrt(v + EPS)                              # (N, G)
        inv_c = jnp.repeat(inv, Cg, axis=1)                   # (N, Cout)
        m_c = jnp.repeat(m, Cg, axis=1)
        scale_nc = gamma[None, :] * inv_c
        shift_nc = beta[None, :] - m_c * scale_nc
    elif normalization == 'in':
        # InstanceNorm2d defaults: affine=False
        m = jnp.sum(s, axis=2) / area                         # (N, Cout)
        v = jnp.sum(ss, axis=2) / area - m * m
        inv = lax.rsqrt(v + EPS)
        scale_nc = inv
        shift_nc = -m * inv
    else:
        raise ValueError(f'Unsupported normalization: {normalization}')

    # fold the conv bias into the shift (kernel 2 recomputes the BIAS-FREE matmul)
    shift_nc = bias[None, :] * scale_nc + shift_nc

    # expand (N, Cout) -> per-row (N, 4*Cout, 1) in (co, kh, kw) row order
    scale_rows = jnp.broadcast_to(scale_nc[:, :, None], (N, Cout, 4)).reshape(N, C4, 1)
    shift_rows = jnp.broadcast_to(shift_nc[:, :, None], (N, Cout, 4)).reshape(N, C4, 1)

    # ---- kernel 2: recompute matmul, apply per-row scale/shift ----------------
    y_norm = pl.pallas_call(
        _upconv_apply_kernel,
        out_shape=jax.ShapeDtypeStruct((N, C4, HWp), jnp.float32),
        grid=(N, n_hw),
        in_specs=[
            pl.BlockSpec((1, Cin, Thw), lambda n, j: (n, 0, j)),
            pl.BlockSpec((C4, Cin), lambda n, j: (0, 0)),
            pl.BlockSpec((1, C4, 1), lambda n, j: (n, 0, 0)),
            pl.BlockSpec((1, C4, 1), lambda n, j: (n, 0, 0)),
        ],
        out_specs=pl.BlockSpec((1, C4, Thw), lambda n, j: (n, 0, j)),
        compiler_params=pltpu.CompilerParams(
            dimension_semantics=("parallel", "parallel"),
            vmem_limit_bytes=_VMEM_LIMIT),
    )(x3, w2, scale_rows, shift_rows)

    # ---- single final NCHW scatter (pure layout glue, per-channel local) ------
    if padded:
        y_norm = y_norm[:, :, :HW]
    out = (y_norm.reshape(N, Cout, 2, 2, H, W)       # (n, co, kh, kw, h, w)
                 .transpose(0, 1, 4, 2, 5, 3)        # (n, co, h, kh, w, kw)
                 .reshape(N, Cout, 2 * H, 2 * W))
    return out


# ---------------- pure-JAX reference (mirrors PyTorch semantics) ----------------

def reference(x, weight, bias, gamma, beta, normalization, num_groups=8):
    N, Cin, H, W = x.shape
    Cout = weight.shape[1]
    # y[n, co, 2i+kh, 2j+kw] = sum_ci x[n,ci,i,j] * weight[ci,co,kh,kw] + bias[co]
    y = jnp.einsum('ncij,cokl->noikjl', x, weight,
                   precision=lax.Precision.HIGHEST)
    y = y.reshape(N, Cout, 2 * H, 2 * W) + bias[None, :, None, None]
    if normalization == 'bn':
        m = jnp.mean(y, axis=(0, 2, 3), keepdims=True)
        v = jnp.mean(jnp.square(y - m), axis=(0, 2, 3), keepdims=True)
        out = (y - m) / jnp.sqrt(v + EPS) * gamma[None, :, None, None] + beta[None, :, None, None]
    elif normalization == 'gn':
        G = num_groups
        yg = y.reshape(N, G, Cout // G, 2 * H, 2 * W)
        m = jnp.mean(yg, axis=(2, 3, 4), keepdims=True)
        v = jnp.mean(jnp.square(yg - m), axis=(2, 3, 4), keepdims=True)
        out = ((yg - m) / jnp.sqrt(v + EPS)).reshape(N, Cout, 2 * H, 2 * W)
        out = out * gamma[None, :, None, None] + beta[None, :, None, None]
    else:  # 'in'
        m = jnp.mean(y, axis=(2, 3), keepdims=True)
        v = jnp.mean(jnp.square(y - m), axis=(2, 3), keepdims=True)
        out = (y - m) / jnp.sqrt(v + EPS)
    return out


if __name__ == "__main__":
    key = jax.random.PRNGKey(0)
    k1, k2, k3 = jax.random.split(key, 3)

    N, Cin, Cout, H, W = 2, 4, 8, 16, 16
    x = jax.random.normal(k1, (N, Cin, H, W), dtype=jnp.float32)
    weight = jax.random.normal(k2, (Cin, Cout, 2, 2), dtype=jnp.float32) * 0.1
    bias = jax.random.normal(k3, (Cout,), dtype=jnp.float32) * 0.1
    gamma = jnp.ones((Cout,), dtype=jnp.float32)   # norm affine default init
    beta = jnp.zeros((Cout,), dtype=jnp.float32)

    for norm in ('gn', 'bn', 'in'):
        out = jax.block_until_ready(
            transp_conv_block(x, weight, bias, gamma, beta, normalization=norm))
        ref = reference(x, weight, bias, gamma, beta, norm)
        # bf16 MXU inputs => relaxed (but still tight) tolerance
        np.testing.assert_allclose(np.asarray(out), np.asarray(ref),
                                   atol=2e-2, rtol=2e-2)

    print("KERNEL_OK")
</pallas_src>

<mosaic_0001>
module attributes {stable_mosaic.version = 11 : i64} {
  func.func @_upconv_stats_kernel(%arg0: i32, %arg1: i32, %arg2: memref<1x4x256xbf16, #tpu.memory_space<vmem>>, %arg3: memref<32x4xbf16, #tpu.memory_space<vmem>>, %arg4: memref<32x1xf32, #tpu.memory_space<vmem>>, %arg5: memref<1x32x1xf32, #tpu.memory_space<vmem>>, %arg6: memref<1x32x1xf32, #tpu.memory_space<vmem>>) attributes {dimension_semantics = [#tpu.dimension_semantics<parallel>, #tpu.dimension_semantics<arbitrary>], iteration_bounds = array<i64: 2, 1>, scalar_prefetch = 0 : i64, scratch_operands = 0 : i64, tpu.core_type = #tpu.core_type<tc>, window_params = [{transform_indices = @transform_0, window_bounds = array<i64: 1, 4, 256>}, {pipeline_mode = #tpu.pipeline_mode<synchronous>, transform_indices = @transform_1, window_bounds = array<i64: 32, 4>}, {pipeline_mode = #tpu.pipeline_mode<synchronous>, transform_indices = @transform_2, window_bounds = array<i64: 32, 1>}, {transform_indices = @transform_3, window_bounds = array<i64: 1, 32, 1>}, {transform_indices = @transform_4, window_bounds = array<i64: 1, 32, 1>}]} {
    %c0 = arith.constant 0 : index
    %c0_0 = arith.constant 0 : index
    %0 = vector.load %arg3[%c0, %c0_0] : memref<32x4xbf16, #tpu.memory_space<vmem>>, vector<32x4xbf16>
    %c0_1 = arith.constant 0 : index
    %c0_2 = arith.constant 0 : index
    %c0_3 = arith.constant 0 : index
    %1 = vector.load %arg2[%c0_1, %c0_2, %c0_3] : memref<1x4x256xbf16, #tpu.memory_space<vmem>>, vector<1x4x256xbf16>
    %2 = vector.shape_cast %1 : vector<1x4x256xbf16> to vector<4x256xbf16>
    %cst = arith.constant dense<0.000000e+00> : vector<32x256xf32>
    %3 = tpu.matmul %0, %2, %cst {dimension_numbers = #tpu.dot_dimension_numbers<[1], [0], [0], [1], [0, 0, 1, 1], [], []>} : vector<32x4xbf16>, vector<4x256xbf16>, vector<32x256xf32> -> vector<32x256xf32>
    %c0_4 = arith.constant 0 : index
    %c0_5 = arith.constant 0 : index
    %4 = vector.load %arg4[%c0_4, %c0_5] : memref<32x1xf32, #tpu.memory_space<vmem>>, vector<32x1xf32>
    %5 = vector.broadcast %4 : vector<32x1xf32> to vector<32x256xf32>
    %6 = arith.addf %3, %5 : vector<32x256xf32>
    %c0_i32 = arith.constant 0 : i32
    %7 = arith.cmpi eq, %arg1, %c0_i32 : i32
    %8 = arith.extui %7 : i1 to i32
    %c0_i32_6 = arith.constant 0 : i32
    %9 = arith.cmpi ne, %8, %c0_i32_6 : i32
    scf.if %9 {
      %cst_21 = arith.constant 0.000000e+00 : f32
      %23 = vector.broadcast %cst_21 : f32 to vector<1x32x1xf32>
      %c0_22 = arith.constant 0 : index
      %c0_23 = arith.constant 0 : index
      %c0_24 = arith.constant 0 : index
      %24 = vector.load %arg5[%c0_22, %c0_23, %c0_24] : memref<1x32x1xf32, #tpu.memory_space<vmem>>, vector<1x32x1xf32>
      tpu.vector_store %arg5[%c0_22, %c0_23, %c0_24], %23 {strides = array<i32>} : memref<1x32x1xf32, #tpu.memory_space<vmem>>, vector<1x32x1xf32>,
      %cst_25 = arith.constant 0.000000e+00 : f32
      %25 = vector.broadcast %cst_25 : f32 to vector<1x32x1xf32>
      %c0_26 = arith.constant 0 : index
      %c0_27 = arith.constant 0 : index
      %c0_28 = arith.constant 0 : index
      %26 = vector.load %arg6[%c0_26, %c0_27, %c0_28] : memref<1x32x1xf32, #tpu.memory_space<vmem>>, vector<1x32x1xf32>
      tpu.vector_store %arg6[%c0_26, %c0_27, %c0_28], %25 {strides = array<i32>} : memref<1x32x1xf32, #tpu.memory_space<vmem>>, vector<1x32x1xf32>,
    } else {
    }
    %c0_7 = arith.constant 0 : index
    %c0_8 = arith.constant 0 : index
    %c0_9 = arith.constant 0 : index
    %10 = vector.load %arg5[%c0_7, %c0_8, %c0_9] : memref<1x32x1xf32, #tpu.memory_space<vmem>>, vector<1x32x1xf32>
    %cst_10 = arith.constant dense<0.000000e+00> : vector<32xf32>
    %11 = vector.multi_reduction <add>, %6, %cst_10 [1] : vector<32x256xf32> to vector<32xf32>
    %12 = vector.shape_cast %11 : vector<32xf32> to vector<32x1xf32>
    %13 = vector.shape_cast %12 : vector<32x1xf32> to vector<1x32x1xf32>
    %14 = arith.addf %10, %13 : vector<1x32x1xf32>
    %c0_11 = arith.constant 0 : index
    %c0_12 = arith.constant 0 : index
    %c0_13 = arith.constant 0 : index
    %15 = vector.load %arg5[%c0_11, %c0_12, %c0_13] : memref<1x32x1xf32, #tpu.memory_space<vmem>>, vector<1x32x1xf32>
    tpu.vector_store %arg5[%c0_11, %c0_12, %c0_13], %14 {strides = array<i32>} : memref<1x32x1xf32, #tpu.memory_space<vmem>>, vector<1x32x1xf32>,
    %c0_14 = arith.constant 0 : index
    %c0_15 = arith.constant 0 : index
    %c0_16 = arith.constant 0 : index
    %16 = vector.load %arg6[%c0_14, %c0_15, %c0_16] : memref<1x32x1xf32, #tpu.memory_space<vmem>>, vector<1x32x1xf32>
    %17 = arith.mulf %6, %6 : vector<32x256xf32>
    %cst_17 = arith.constant dense<0.000000e+00> : vector<32xf32>
    %18 = vector.multi_reduction <add>, %17, %cst_17 [1] : vector<32x256xf32> to vector<32xf32>
    %19 = vector.shape_cast %18 : vector<32xf32> to vector<32x1xf32>
    %20 = vector.shape_cast %19 : vector<32x1xf32> to vector<1x32x1xf32>
    %21 = arith.addf %16, %20 : vector<1x32x1xf32>
    %c0_18 = arith.constant 0 : index
    %c0_19 = arith.constant 0 : index
    %c0_20 = arith.constant 0 : index
    %22 = vector.load %arg6[%c0_18, %c0_19, %c0_20] : memref<1x32x1xf32, #tpu.memory_space<vmem>>, vector<1x32x1xf32>
    tpu.vector_store %arg6[%c0_18, %c0_19, %c0_20], %21 {strides = array<i32>} : memref<1x32x1xf32, #tpu.memory_space<vmem>>, vector<1x32x1xf32>,
    return
  }
  func.func @transform_0(%arg0: i32, %arg1: i32) -> (i32, i32, i32) {
    %c0_i32 = arith.constant 0 : i32
    %c0_i32_0 = arith.constant 0 : i32
    return %arg0, %c0_i32, %arg1 : i32, i32, i32
  }
  func.func @transform_1(%arg0: i32, %arg1: i32) -> (i32, i32) {
    %c0_i32 = arith.constant 0 : i32
    %c0_i32_0 = arith.constant 0 : i32
    %c0_i32_1 = arith.constant 0 : i32
    return %c0_i32, %c0_i32_0 : i32, i32
  }
  func.func @transform_2(%arg0: i32, %arg1: i32) -> (i32, i32) {
    %c0_i32 = arith.constant 0 : i32
    %c0_i32_0 = arith.constant 0 : i32
    %c0_i32_1 = arith.constant 0 : i32
    return %c0_i32, %c0_i32_0 : i32, i32
  }
  func.func @transform_3(%arg0: i32, %arg1: i32) -> (i32, i32, i32) {
    %c0_i32 = arith.constant 0 : i32
    %c0_i32_0 = arith.constant 0 : i32
    %c0_i32_1 = arith.constant 0 : i32
    return %arg0, %c0_i32, %c0_i32_0 : i32, i32, i32
  }
  func.func @transform_4(%arg0: i32, %arg1: i32) -> (i32, i32, i32) {
    %c0_i32 = arith.constant 0 : i32
    %c0_i32_0 = arith.constant 0 : i32
    %c0_i32_1 = arith.constant 0 : i32
    return %arg0, %c0_i32, %c0_i32_0 : i32, i32, i32
  }
}

</mosaic_0001>

<bundles_post_ra>
// kernel: tpu_custom_call.1
= control target key start
LH: loop header
LB: loop body
LE: loop exit
PB: predicated region body
PF: predicated region fallthrough
CT: control target
= control target key end

     0   :  { %s616_s15 = smov 0   ;;  %s618_s16 = smov 0   ;;  %s718_s0 = inlined_call_operand.vmem [shape: bf16[2,4,256], index: 0, kind: input, shape index: {}]   ;;  %s719_s1 = inlined_call_operand.vmem [shape: bf16[32,4], index: 1, kind: input, shape index: {}]   ;;  %s720_s2 = inlined_call_operand.vmem [shape: f32[32,1], index: 2, kind: input, shape index: {}]   ;;  %s721_s3 = inlined_call_operand.vmem [shape: f32[2,32,1], index: 3, kind: output, shape index: {0}]   ;;  %s722_s4 = inlined_call_operand.vmem [shape: f32[2,32,1], index: 4, kind: output, shape index: {1}]  }
   0x1   :  { %s620_s17 = smov 0  }
   0x2 LB: > { %s27_s18 = sadd.s32 1, %s583_s16  ;;  %p509_p0 = scmp.ge.s32.totalorder %s587_s17, 1  ;;  %s587_s17 = sphi %s620_s17, %s15_s17   ;;  %s583_s16 = sphi %s618_s16, %s724_s16   ;;  %s579_s15 = sphi %s616_s15, %s723_s15  }
   0x3   : > { %p29_p1 = scmp.ge.s32.totalorder %s27_s18, 2  ;;  %p184_p2 = scmp.lt.s32.totalorder %s587_s17, 3 }
   0x5   : > { %s726_s18 = smov (%p29_p1, %s27_s18), 0  ;;  %p185_p3 = pnand %p509_p0, %p184_p2 }
   0x6   : > { %p220_p4 = scmp.lt.s32.totalorder (!%p185_p3), %s579_s15, 1 }
   0x7   : > { %188 = sbr.rel (%p185_p3) target bundleno = 317 (0x13d), region = 32 }
   0xc   : > { %v245_v0 = vld [vmem:[%s720_s2] sm:$0xff]  ;;  %v589_v1 = vmov 0   ;;  %v247_v2 = vld [vmem:[%s720_s2 + $0x10] sm:$0xff]  ;;  %s728_s15 = smov (!%p220_p4, %s579_s15), 1  ;;  %v246_v4 = vld [vmem:[%s720_s2 + $0x8] sm:$0xff]  ;;  %vm290_vm0 = vcmask 1041408  }
   0xd   : > { %563 = vset.pattern.permute.xlu0 %v589_v1  ;;  %564 = vset.pattern.permute.xlu1 %v589_v1  ;;  %s530_s23 = sshll.u32 %s728_s15, 2  ;;  %v248_v5 = vld [vmem:[%s720_s2 + $0x18] sm:$0xff]  ;;  %v533_v10 = vld [vmem:[%s719_s1] sm:$0xff]  ;;  %vm283_vm1 = vcmask 31744   ;;  %v534_v11 = vld [vmem:[%s719_s1 + $0x8] sm:$0xff]  ;;  %s531_s9 = sshll.u32 %s728_s15, 5 }
   0xe   : > { %251 = vperm.xlu0 %563, %v245_v0   ;;  %261 = vperm.xlu1 %564, %v247_v2   ;;  %s227_s26 = scalar_lea.vmem %s718_s0, %s530_s23  ;;  %s662_s12 = scalar_lea.vmem %s721_s3, %s531_s9  ;;  %vm337_vm2 = vcmask 7168   ;;  %v590_v31 = vmov 0.0  }
   0xf   : > { %v244_v3 = vld [vmem:[%s227_s26] sm:$0xf]  ;;  %338 = vst.msk [vmem:[%s662_s12] sm:$0xff] %vm337_vm2, %v590_v31  ;;  %s671_s15 = scalar_lea.vmem %s722_s4, %s531_s9 }
  0x10   : > { %280 = vst [vmem:[#allocation1] ss:$4 sm:$0xff] %v244_v3 }
  0x11   : > { %339 = vst.msk [vmem:[%s662_s12 + $0x8] sm:$0xff] %vm337_vm2, %v590_v31 }
  0x12   : > { %340 = vst.msk [vmem:[%s662_s12 + $0x10] sm:$0xff] %vm337_vm2, %v590_v31 }
  0x13   : > { %341 = vst.msk [vmem:[%s662_s12 + $0x18] sm:$0xff] %vm337_vm2, %v590_v31 }
  0x14   : > { %342 = vst.msk [vmem:[%s671_s15] sm:$0xff] %vm337_vm2, %v590_v31 }
  0x15   : > { %343 = vst.msk [vmem:[%s671_s15 + $0x8] sm:$0xff] %vm337_vm2, %v590_v31 }
  0x16   : > { %256 = vperm.xlu0 %563, %v246_v4   ;;  %266 = vperm.xlu1 %564, %v248_v5   ;;  %344 = vst.msk [vmem:[%s671_s15 + $0x10] sm:$0xff] %vm337_vm2, %v590_v31  ;;  %v346_v49 = vld [vmem:[%s662_s12] sm:$0xff] }
  0x17   : > { %v281_v6 = vld.sshfl [vmem:[#allocation1] sm:$0xff pattern:$0x73625140]  ;;  %v282_v7 = vld.sshfl [vmem:[#allocation1 + $0x8] sm:$0xff pattern:$0x73625140] }
  0x18   : > { %v291_v8 = vsel %vm290_vm0, %v281_v6, 0  ;;  %v293_v9 = vsel %vm290_vm0, %v282_v7, 0  ;;  %345 = vst.msk [vmem:[%s671_s15 + $0x18] sm:$0xff] %vm337_vm2, %v590_v31  ;;  %v347_v53 = vld [vmem:[%s662_s12 + $0x8] sm:$0xff] }
  0x19   : > { %302 = vmatpush.bf16.msra.mxu0 %v291_v8  ;;  %321 = vmatpush.bf16.msra.mxu1 %v293_v9  ;;  %v348_v52 = vld [vmem:[%s662_s12 + $0x10] sm:$0xff] }
  0x1a   : > { %535 = vmatpush.bf16.msra.mxu2 %v291_v8  ;;  %536 = vmatpush.bf16.msra.mxu3 %v293_v9  ;;  %v349_v58 = vld [vmem:[%s662_s12 + $0x18] sm:$0xff] }
  0x1b   : > { %v371_v59 = vld [vmem:[%s671_s15] sm:$0xff] }
  0x1c   : > { %524 = vmatmul.msk.bf16.vlgmr.msra.gmra.mxu0 %vm283_vm1, %v533_v10  ;;  %526 = vmatmul.msk.bf16.vlgmr.msra.gmra.mxu1 %vm283_vm1, %v533_v10  ;;  %v372_v0 = vld [vmem:[%s671_s15 + $0x8] sm:$0xff] }
  0x1d   : > { %525 = vmatmul.msk.bf16.vlgmr.msra.gmra.mxu2 %vm283_vm1, %v534_v11  ;;  %527 = vmatmul.msk.bf16.vlgmr.msra.gmra.mxu3 %vm283_vm1, %v534_v11  ;;  %v373_v3 = vld [vmem:[%s671_s15 + $0x10] sm:$0xff] }
  0x1f   : > { %v374_v6 = vld [vmem:[%s671_s15 + $0x18] sm:$0xff] }
  0x80   : > { %v252_v12 = vpop.permute.xlu0 %251  ;;  %v262_v18 = vpop.permute.xlu1 %261 }
  0x88   : > { %v257_v19 = vpop.permute.xlu0 %256  ;;  %v267_v30 = vpop.permute.xlu1 %266 }
  0x99   : > { %v304_v13 = vpop.f32.mrf.mxu0  ;;  %v323_v14 = vpop.f32.mrf.mxu1 }
  0x9a   : > { %v305_v15 = vadd.f32 %v304_v13, %v252_v12  ;;  %v324_v16 = vadd.f32 %v323_v14, %v252_v12 }
  0x9c   : > { %v350_v17 = vadd.f32 %v324_v16, %v305_v15  ;;  %v375_v32 = vmul.f32 %v305_v15, %v305_v15  ;;  %v376_v33 = vmul.f32 %v324_v16, %v324_v16 }
  0x9e   : > { %351 = vadd.xlane.f32.xlu2 %v350_v17  ;;  %v383_v39 = vadd.f32 %v376_v33, %v375_v32 }
  0xa0   : > { %v309_v20 = vpop.f32.mrf.mxu2  ;;  %v328_v21 = vpop.f32.mrf.mxu3 }
  0xa1   : > { %v306_v22 = vpop.f32.mrf.mxu0  ;;  %v325_v23 = vpop.f32.mrf.mxu1  ;;  %v310_v24 = vadd.f32 %v309_v20, %v262_v18  ;;  %v329_v25 = vadd.f32 %v328_v21, %v262_v18 }
  0xa2   : > { %v307_v26 = vadd.f32 %v306_v22, %v257_v19  ;;  %v326_v27 = vadd.f32 %v325_v23, %v257_v19 }
  0xa3   : > { %v356_v28 = vadd.f32 %v329_v25, %v310_v24  ;;  %v379_v43 = vmul.f32 %v310_v24, %v310_v24  ;;  %v380_v44 = vmul.f32 %v329_v25, %v329_v25 }
  0xa4   : > { %v353_v29 = vadd.f32 %v326_v27, %v307_v26  ;;  %v377_v40 = vmul.f32 %v307_v26, %v307_v26  ;;  %v378_v41 = vmul.f32 %v326_v27, %v326_v27 }
  0xa5   : > { %357 = vadd.xlane.f32.xlu0 %v356_v28  ;;  %v389_v45 = vadd.f32 %v380_v44, %v379_v43 }
  0xa6   : > { %354 = vadd.xlane.f32.xlu2 %v353_v29  ;;  %v386_v42 = vadd.f32 %v378_v41, %v377_v40 }
  0xa8   : > { %v311_v34 = vpop.f32.mrf.mxu2  ;;  %v330_v35 = vpop.f32.mrf.mxu3 }
  0xa9   : > { %v312_v36 = vadd.f32 %v311_v34, %v267_v30  ;;  %v331_v37 = vadd.f32 %v330_v35, %v267_v30 }
  0xab   : > { %v359_v38 = vadd.f32 %v331_v37, %v312_v36  ;;  %v381_v46 = vmul.f32 %v312_v36, %v312_v36  ;;  %v382_v47 = vmul.f32 %v331_v37, %v331_v37 }
  0xad   : > { %360 = vadd.xlane.f32.xlu1 %v359_v38  ;;  %v392_v48 = vadd.f32 %v382_v47, %v381_v46 }
  0xae   : > { %384 = vadd.xlane.f32.xlu2 %v383_v39 }
  0xb6   : > { %387 = vadd.xlane.f32.xlu2 %v386_v42 }
  0xbe   : > { %390 = vadd.xlane.f32.xlu2 %v389_v45 }
  0xc6   : > { %393 = vadd.xlane.f32.xlu2 %v392_v48 }
 0x111   : > { %v352_v50 = vpop.xlane.xlu2 %351 }
 0x112   : > { %v362_v51 = vadd.f32 %v352_v50, %v346_v49 }
 0x114   : > { %367 = vst.msk [vmem:[%s662_s12] sm:$0xff] %vm337_vm2, %v362_v51 }
 0x118   : > { %v358_v54 = vpop.xlane.xlu0 %357 }
 0x119   : > { %v355_v55 = vpop.xlane.xlu2 %354  ;;  %v364_v56 = vadd.f32 %v358_v54, %v348_v52 }
 0x11a   : > { %v363_v57 = vadd.f32 %v355_v55, %v347_v53 }
 0x11b   : > { %369 = vst.msk [vmem:[%s662_s12 + $0x10] sm:$0xff] %vm337_vm2, %v364_v56 }
 0x11c   : > { %368 = vst.msk [vmem:[%s662_s12 + $0x8] sm:$0xff] %vm337_vm2, %v363_v57 }
 0x120   : > { %v361_v60 = vpop.xlane.xlu1 %360 }
 0x121   : > { %v385_v61 = vpop.xlane.xlu2 %384  ;;  %v365_v62 = vadd.f32 %v361_v60, %v349_v58 }
 0x122   : > { %v395_v63 = vadd.f32 %v385_v61, %v371_v59 }
 0x123   : > { %370 = vst.msk [vmem:[%s662_s12 + $0x18] sm:$0xff] %vm337_vm2, %v365_v62 }
 0x124   : > { %399 = vst.msk [vmem:[%s671_s15] sm:$0xff] %vm337_vm2, %v395_v63 }
 0x129   : > { %v388_v1 = vpop.xlane.xlu2 %387 }
 0x12a   : > { %v396_v2 = vadd.f32 %v388_v1, %v372_v0 }
 0x12c   : > { %400 = vst.msk [vmem:[%s671_s15 + $0x8] sm:$0xff] %vm337_vm2, %v396_v2 }
 0x131   : > { %v391_v4 = vpop.xlane.xlu2 %390 }
 0x132   : > { %v397_v5 = vadd.f32 %v391_v4, %v373_v3 }
 0x134   : > { %401 = vst.msk [vmem:[%s671_s15 + $0x10] sm:$0xff] %vm337_vm2, %v397_v5 }
 0x139   : > { %v394_v7 = vpop.xlane.xlu2 %393 }
 0x13a   : > { %v398_v8 = vadd.f32 %v394_v7, %v374_v6 }
 0x13c   : > { %402 = vst.msk [vmem:[%s671_s15 + $0x18] sm:$0xff] %vm337_vm2, %v398_v8 }
 0x13d PF: > { %s15_s17 = sadd.s32 1, %s587_s17   ;;  %s723_s15 = smov %s583_s16 }
 0x13e   : > { %p12_p5 = scmp.ge.s32.totalorder %s15_s17, 4   ;;  %s724_s16 = smov %s726_s18 }
 0x140   :  { %14 = sbr.rel (!%p12_p5) target bundleno = 2 (0x2), region = 78 }

</bundles_post_ra>
